<compile_context>
chip_gen: v7x
topology: tpu7x:2x2x1
jax: 0.10.0
libtpu: 0.0.40
codegen_flags: <defaults>
</compile_context>

<pallas_src>
import functools
import math

import jax
import jax.numpy as jnp
from jax import lax
from jax.experimental import pallas as pl
from jax.experimental.pallas import tpu as pltpu


def _round_up(x, n):
    return ((x + n - 1) // n) * n


# murmur3-style mixing constants
_C1 = 0x9E3779B1
_C2 = 0x85EBCA6B
_C3 = 0xC2B2AE35


def _dropout_bits(seed_u32, layer, row0, shape):
    """Counter-based per-element random bits = hash(seed, layer, row, col)."""
    rows = (lax.broadcasted_iota(jnp.int32, shape, 0) + row0).astype(jnp.uint32)
    cols = lax.broadcasted_iota(jnp.int32, shape, 1).astype(jnp.uint32)
    x = rows * jnp.uint32(_C1)
    x = x ^ (cols * jnp.uint32(_C2))
    x = x ^ seed_u32
    x = x ^ jnp.uint32(((layer + 1) * _C3) & 0xFFFFFFFF)
    # murmur3 finalizer
    x = x ^ (x >> 16)
    x = x * jnp.uint32(_C2)
    x = x ^ (x >> 13)
    x = x * jnp.uint32(_C3)
    x = x ^ (x >> 16)
    return x


def _mish(h):
    # mish(x) = x * tanh(softplus(x)) = x * t / (t + 2) with t = e*(e+2), e=exp(x)
    # -> one EUP exp + one approx reciprocal instead of exp + log1p + tanh.
    # Clamp keeps exp finite; for x >= 20, t/(t+2) == 1 in f32 anyway.
    e = jnp.exp(jnp.minimum(h, 20.0))
    t = e * (e + 2.0)
    return h * (t * pl.reciprocal(t + 2.0, approx=True))


def prenet_kernel(seed_ref, x_ref, w1_ref, w2_ref, w3_ref, o_ref,
                  *, keep_threshold, keep_scale, apply_dropout, tile_m):
    row0 = pl.program_id(0) * tile_m                  # global row offset
    seed = seed_ref[0].astype(jnp.uint32)

    h = x_ref[...]
    for layer, w_ref in enumerate((w1_ref, w2_ref, w3_ref)):
        w = w_ref[...]
        # Linear (bias=False): x @ W^T, with W pre-transposed to (in, out)
        # in the wrapper (no per-tile transpose / XLU work in the hot loop).
        h = jnp.dot(h.astype(w.dtype), w, preferred_element_type=jnp.float32)
        h = _mish(h)                                  # f32 elementwise
        if apply_dropout:
            bits = _dropout_bits(seed, layer, row0, h.shape)
            keep = (bits >= jnp.uint32(keep_threshold)).astype(jnp.float32)
            h = h * (keep * keep_scale)               # inverted dropout
    o_ref[...] = h.astype(o_ref.dtype)


def prenet_forward(x, weights, *, drop_prob=0.3, training=True, seed=1234,
                   tile_m=512, matmul_dtype=jnp.bfloat16):
    """x: [N, *, in_dim];  weights: list of 3 (out_dim, in_dim) arrays."""
    assert len(weights) == 3, "this kernel is specialized to 3 prenet layers"
    in_dim = x.shape[-1]
    assert weights[0].shape[1] == in_dim
    dims = [w.shape[0] for w in weights]              # torch layout (out, in)
    out_dim = dims[-1]
    lead = x.shape[:-1]
    m = int(math.prod(lead))

    # Pre-transpose once in the wrapper; matmul operands in bf16 (f32 accumulate,
    # f32 elementwise).  Pass matmul_dtype=jnp.float32 for exact f32 matmuls.
    wts = [w.T.astype(matmul_dtype) for w in weights]
    # Lane-dense output: pad the last layer's output to a multiple of 128 lanes.
    out_pad = _round_up(out_dim, 128)
    if out_pad != out_dim:
        wts[-1] = jnp.pad(wts[-1], ((0, 0), (0, out_pad - out_dim)))

    x2d = x.reshape(m, in_dim).astype(matmul_dtype)

    # Big row tiles; keep a multiple of 16 (bf16 sublane packing).  Rows are
    # zero-padded so arbitrary M works (grid = cdiv(M, tile)).
    row_align = 16
    tile = _round_up(min(tile_m, _round_up(m, row_align)), row_align)
    grid_m = pl.cdiv(m, tile)
    m_pad = grid_m * tile
    if m_pad != m:
        x2d = jnp.pad(x2d, ((0, m_pad - m), (0, 0)))

    apply_dropout = bool(training) and float(drop_prob) > 0.0
    keep_threshold = min(int(float(drop_prob) * (2 ** 32)), 2 ** 32 - 1)
    keep_scale = 1.0 / (1.0 - float(drop_prob)) if apply_dropout else 1.0

    kernel = functools.partial(
        prenet_kernel,
        keep_threshold=keep_threshold,
        keep_scale=keep_scale,
        apply_dropout=apply_dropout,
        tile_m=tile)

    d1, d2 = dims[0], dims[1]
    cost = pl.CostEstimate(
        flops=2 * m_pad * (in_dim * d1 + d1 * d2 + d2 * out_pad),
        transcendentals=2 * m_pad * (d1 + d2 + out_pad),
        bytes_accessed=(x2d.size * x2d.dtype.itemsize
                        + sum(w.size * w.dtype.itemsize for w in wts)
                        + m_pad * out_pad * x.dtype.itemsize))

    seed_arr = jnp.array([seed], dtype=jnp.int32)

    out2d = pl.pallas_call(
        kernel,
        out_shape=jax.ShapeDtypeStruct((m_pad, out_pad), x.dtype),
        grid_spec=pltpu.PrefetchScalarGridSpec(
            num_scalar_prefetch=1,
            grid=(grid_m,),
            in_specs=[
                # activations: tiled over rows
                pl.BlockSpec((tile, in_dim), lambda i, seed: (i, 0)),
                # weights: fully resident in VMEM (~16 KiB total)
                pl.BlockSpec(wts[0].shape, lambda i, seed: (0, 0)),
                pl.BlockSpec(wts[1].shape, lambda i, seed: (0, 0)),
                pl.BlockSpec(wts[2].shape, lambda i, seed: (0, 0)),
            ],
            out_specs=pl.BlockSpec((tile, out_pad), lambda i, seed: (i, 0)),
        ),
        compiler_params=pltpu.CompilerParams(
            # row axis is fully independent (counter-based PRNG) -> megacore ok
            dimension_semantics=("parallel",)),
        cost_estimate=cost,
    )(seed_arr, x2d, *wts)

    return out2d[:m, :out_dim].reshape(*lead, out_dim)


def xavier_uniform(key, out_dim, in_dim, gain=1.0, dtype=jnp.float32):
    # torch.nn.init.xavier_uniform_ with gain = calculate_gain('linear') = 1.0
    bound = gain * math.sqrt(6.0 / (in_dim + out_dim))
    return jax.random.uniform(key, (out_dim, in_dim), dtype,
                              minval=-bound, maxval=bound)


if __name__ == "__main__":
    # PreNet(in_dim=32, sizes=[32, 32, 64], drop_prob=0.3, activate=mish)
    in_dim = 32
    sizes = [32, 32, 64]
    N, T = 2, 8  # input [N, T, in_dim]

    key = jax.random.PRNGKey(0)
    kx, k1, k2, k3 = jax.random.split(key, 4)

    x = jax.random.normal(kx, (N, T, in_dim), dtype=jnp.float32)
    in_sizes = [in_dim] + sizes[:-1]
    weights = [xavier_uniform(k, o, i)
               for k, i, o in zip((k1, k2, k3), in_sizes, sizes)]

    out = prenet_forward(x, weights, drop_prob=0.3, training=True, seed=1234)
    out = jax.block_until_ready(out)
    assert out.shape == (N, T, sizes[-1]), out.shape
    assert bool(jnp.all(jnp.isfinite(out))), "non-finite output"

    # TODO(synk): dropout masks come from an in-kernel counter-based hash PRNG;
    # deterministic per (seed, element) but not bit-identical to torch's RNG.
    print("KERNEL_OK")
</pallas_src>

<mosaic_0001>
module attributes {stable_mosaic.version = 11 : i64} {
  func.func @prenet_kernel(%arg0: i32, %arg1: memref<1xi32, #tpu.memory_space<smem>>, %arg2: memref<16x32xbf16, #tpu.memory_space<vmem>>, %arg3: memref<32x32xbf16, #tpu.memory_space<vmem>>, %arg4: memref<32x32xbf16, #tpu.memory_space<vmem>>, %arg5: memref<32x128xbf16, #tpu.memory_space<vmem>>, %arg6: memref<16x128xf32, #tpu.memory_space<vmem>>) attributes {dimension_semantics = [#tpu.dimension_semantics<parallel>], iteration_bounds = array<i64: 1>, scalar_prefetch = 1 : i64, scratch_operands = 0 : i64, tpu.core_type = #tpu.core_type<tc>, window_params = [{transform_indices = @transform_0, window_bounds = array<i64: 16, 32>}, {pipeline_mode = #tpu.pipeline_mode<synchronous>, transform_indices = @transform_1, window_bounds = array<i64: 32, 32>}, {pipeline_mode = #tpu.pipeline_mode<synchronous>, transform_indices = @transform_2, window_bounds = array<i64: 32, 32>}, {pipeline_mode = #tpu.pipeline_mode<synchronous>, transform_indices = @transform_3, window_bounds = array<i64: 32, 128>}, {transform_indices = @transform_4, window_bounds = array<i64: 16, 128>}]} {
    %c16_i32 = arith.constant 16 : i32
    %0 = arith.muli %arg0, %c16_i32 : i32
    %c0 = arith.constant 0 : index
    %1 = memref.load %arg1[%c0] : memref<1xi32, #tpu.memory_space<smem>>
    %c0_0 = arith.constant 0 : index
    %c0_1 = arith.constant 0 : index
    %2 = vector.load %arg2[%c0_0, %c0_1] : memref<16x32xbf16, #tpu.memory_space<vmem>>, vector<16x32xbf16>
    %c0_2 = arith.constant 0 : index
    %c0_3 = arith.constant 0 : index
    %3 = vector.load %arg3[%c0_2, %c0_3] : memref<32x32xbf16, #tpu.memory_space<vmem>>, vector<32x32xbf16>
    %cst = arith.constant dense<0.000000e+00> : vector<16x32xf32>
    %4 = tpu.matmul %2, %3, %cst {dimension_numbers = #tpu.dot_dimension_numbers<[1], [0], [0], [1], [0, 0, 1, 1], [], []>} : vector<16x32xbf16>, vector<32x32xbf16>, vector<16x32xf32> -> vector<16x32xf32>
    %cst_4 = arith.constant 2.000000e+01 : f32
    %5 = vector.broadcast %cst_4 : f32 to vector<16x32xf32>
    %6 = arith.minimumf %4, %5 : vector<16x32xf32>
    %7 = math.exp %6 : vector<16x32xf32>
    %cst_5 = arith.constant 2.000000e+00 : f32
    %8 = vector.broadcast %cst_5 : f32 to vector<16x32xf32>
    %9 = arith.addf %7, %8 : vector<16x32xf32>
    %10 = arith.mulf %7, %9 : vector<16x32xf32>
    %cst_6 = arith.constant 2.000000e+00 : f32
    %11 = vector.broadcast %cst_6 : f32 to vector<16x32xf32>
    %12 = arith.addf %10, %11 : vector<16x32xf32>
    %13 = tpu.reciprocal %12 {approx = true} : vector<16x32xf32> -> vector<16x32xf32>
    %14 = arith.mulf %10, %13 : vector<16x32xf32>
    %15 = arith.mulf %4, %14 : vector<16x32xf32>
    %16 = tpu.iota {dimensions = array<i32: 0>} : vector<16x32xi32>
    %17 = vector.broadcast %0 : i32 to vector<16x32xi32>
    %18 = arith.addi %16, %17 : vector<16x32xi32>
    %19 = tpu.iota {dimensions = array<i32: 1>} : vector<16x32xi32>
    %c-1640531535_i32 = arith.constant -1640531535 : i32
    %20 = vector.broadcast %c-1640531535_i32 : i32 to vector<16x32xi32>
    %21 = arith.muli %18, %20 : vector<16x32xi32>
    %c-2048144789_i32 = arith.constant -2048144789 : i32
    %22 = vector.broadcast %c-2048144789_i32 : i32 to vector<16x32xi32>
    %23 = arith.muli %19, %22 : vector<16x32xi32>
    %24 = arith.xori %21, %23 : vector<16x32xi32>
    %25 = vector.broadcast %1 : i32 to vector<16x32xi32>
    %26 = arith.xori %24, %25 : vector<16x32xi32>
    %c-1028477387_i32 = arith.constant -1028477387 : i32
    %27 = vector.broadcast %c-1028477387_i32 : i32 to vector<16x32xi32>
    %28 = arith.xori %26, %27 : vector<16x32xi32>
    %c16_i32_7 = arith.constant 16 : i32
    %29 = vector.broadcast %c16_i32_7 : i32 to vector<16x32xi32>
    %30 = arith.shrui %28, %29 : vector<16x32xi32>
    %31 = arith.xori %28, %30 : vector<16x32xi32>
    %c-2048144789_i32_8 = arith.constant -2048144789 : i32
    %32 = vector.broadcast %c-2048144789_i32_8 : i32 to vector<16x32xi32>
    %33 = arith.muli %31, %32 : vector<16x32xi32>
    %c13_i32 = arith.constant 13 : i32
    %34 = vector.broadcast %c13_i32 : i32 to vector<16x32xi32>
    %35 = arith.shrui %33, %34 : vector<16x32xi32>
    %36 = arith.xori %33, %35 : vector<16x32xi32>
    %c-1028477387_i32_9 = arith.constant -1028477387 : i32
    %37 = vector.broadcast %c-1028477387_i32_9 : i32 to vector<16x32xi32>
    %38 = arith.muli %36, %37 : vector<16x32xi32>
    %c16_i32_10 = arith.constant 16 : i32
    %39 = vector.broadcast %c16_i32_10 : i32 to vector<16x32xi32>
    %40 = arith.shrui %38, %39 : vector<16x32xi32>
    %41 = arith.xori %38, %40 : vector<16x32xi32>
    %c1288490188_i32 = arith.constant 1288490188 : i32
    %42 = vector.broadcast %c1288490188_i32 : i32 to vector<16x32xi32>
    %43 = arith.cmpi uge, %41, %42 : vector<16x32xi32>
    %44 = arith.extui %43 : vector<16x32xi1> to vector<16x32xi32>
    %45 = arith.sitofp %44 : vector<16x32xi32> to vector<16x32xf32>
    %cst_11 = arith.constant 1.42857146 : f32
    %46 = vector.broadcast %cst_11 : f32 to vector<16x32xf32>
    %47 = arith.mulf %45, %46 : vector<16x32xf32>
    %48 = arith.mulf %15, %47 : vector<16x32xf32>
    %c0_12 = arith.constant 0 : index
    %c0_13 = arith.constant 0 : index
    %49 = vector.load %arg4[%c0_12, %c0_13] : memref<32x32xbf16, #tpu.memory_space<vmem>>, vector<32x32xbf16>
    %50 = arith.truncf %48 : vector<16x32xf32> to vector<16x32xbf16>
    %cst_14 = arith.constant dense<0.000000e+00> : vector<16x32xf32>
    %51 = tpu.matmul %50, %49, %cst_14 {dimension_numbers = #tpu.dot_dimension_numbers<[1], [0], [0], [1], [0, 0, 1, 1], [], []>} : vector<16x32xbf16>, vector<32x32xbf16>, vector<16x32xf32> -> vector<16x32xf32>
    %cst_15 = arith.constant 2.000000e+01 : f32
    %52 = vector.broadcast %cst_15 : f32 to vector<16x32xf32>
    %53 = arith.minimumf %51, %52 : vector<16x32xf32>
    %54 = math.exp %53 : vector<16x32xf32>
    %cst_16 = arith.constant 2.000000e+00 : f32
    %55 = vector.broadcast %cst_16 : f32 to vector<16x32xf32>
    %56 = arith.addf %54, %55 : vector<16x32xf32>
    %57 = arith.mulf %54, %56 : vector<16x32xf32>
    %cst_17 = arith.constant 2.000000e+00 : f32
    %58 = vector.broadcast %cst_17 : f32 to vector<16x32xf32>
    %59 = arith.addf %57, %58 : vector<16x32xf32>
    %60 = tpu.reciprocal %59 {approx = true} : vector<16x32xf32> -> vector<16x32xf32>
    %61 = arith.mulf %57, %60 : vector<16x32xf32>
    %62 = arith.mulf %51, %61 : vector<16x32xf32>
    %63 = tpu.iota {dimensions = array<i32: 0>} : vector<16x32xi32>
    %64 = vector.broadcast %0 : i32 to vector<16x32xi32>
    %65 = arith.addi %63, %64 : vector<16x32xi32>
    %66 = tpu.iota {dimensions = array<i32: 1>} : vector<16x32xi32>
    %c-1640531535_i32_18 = arith.constant -1640531535 : i32
    %67 = vector.broadcast %c-1640531535_i32_18 : i32 to vector<16x32xi32>
    %68 = arith.muli %65, %67 : vector<16x32xi32>
    %c-2048144789_i32_19 = arith.constant -2048144789 : i32
    %69 = vector.broadcast %c-2048144789_i32_19 : i32 to vector<16x32xi32>
    %70 = arith.muli %66, %69 : vector<16x32xi32>
    %71 = arith.xori %68, %70 : vector<16x32xi32>
    %72 = vector.broadcast %1 : i32 to vector<16x32xi32>
    %73 = arith.xori %71, %72 : vector<16x32xi32>
    %c-2056954774_i32 = arith.constant -2056954774 : i32
    %74 = vector.broadcast %c-2056954774_i32 : i32 to vector<16x32xi32>
    %75 = arith.xori %73, %74 : vector<16x32xi32>
    %c16_i32_20 = arith.constant 16 : i32
    %76 = vector.broadcast %c16_i32_20 : i32 to vector<16x32xi32>
    %77 = arith.shrui %75, %76 : vector<16x32xi32>
    %78 = arith.xori %75, %77 : vector<16x32xi32>
    %c-2048144789_i32_21 = arith.constant -2048144789 : i32
    %79 = vector.broadcast %c-2048144789_i32_21 : i32 to vector<16x32xi32>
    %80 = arith.muli %78, %79 : vector<16x32xi32>
    %c13_i32_22 = arith.constant 13 : i32
    %81 = vector.broadcast %c13_i32_22 : i32 to vector<16x32xi32>
    %82 = arith.shrui %80, %81 : vector<16x32xi32>
    %83 = arith.xori %80, %82 : vector<16x32xi32>
    %c-1028477387_i32_23 = arith.constant -1028477387 : i32
    %84 = vector.broadcast %c-1028477387_i32_23 : i32 to vector<16x32xi32>
    %85 = arith.muli %83, %84 : vector<16x32xi32>
    %c16_i32_24 = arith.constant 16 : i32
    %86 = vector.broadcast %c16_i32_24 : i32 to vector<16x32xi32>
    %87 = arith.shrui %85, %86 : vector<16x32xi32>
    %88 = arith.xori %85, %87 : vector<16x32xi32>
    %c1288490188_i32_25 = arith.constant 1288490188 : i32
    %89 = vector.broadcast %c1288490188_i32_25 : i32 to vector<16x32xi32>
    %90 = arith.cmpi uge, %88, %89 : vector<16x32xi32>
    %91 = arith.extui %90 : vector<16x32xi1> to vector<16x32xi32>
    %92 = arith.sitofp %91 : vector<16x32xi32> to vector<16x32xf32>
    %cst_26 = arith.constant 1.42857146 : f32
    %93 = vector.broadcast %cst_26 : f32 to vector<16x32xf32>
    %94 = arith.mulf %92, %93 : vector<16x32xf32>
    %95 = arith.mulf %62, %94 : vector<16x32xf32>
    %c0_27 = arith.constant 0 : index
    %c0_28 = arith.constant 0 : index
    %96 = vector.load %arg5[%c0_27, %c0_28] : memref<32x128xbf16, #tpu.memory_space<vmem>>, vector<32x128xbf16>
    %97 = arith.truncf %95 : vector<16x32xf32> to vector<16x32xbf16>
    %cst_29 = arith.constant dense<0.000000e+00> : vector<16x128xf32>
    %98 = tpu.matmul %97, %96, %cst_29 {dimension_numbers = #tpu.dot_dimension_numbers<[1], [0], [0], [1], [0, 0, 1, 1], [], []>} : vector<16x32xbf16>, vector<32x128xbf16>, vector<16x128xf32> -> vector<16x128xf32>
    %cst_30 = arith.constant 2.000000e+01 : f32
    %99 = vector.broadcast %cst_30 : f32 to vector<16x128xf32>
    %100 = arith.minimumf %98, %99 : vector<16x128xf32>
    %101 = math.exp %100 : vector<16x128xf32>
    %cst_31 = arith.constant 2.000000e+00 : f32
    %102 = vector.broadcast %cst_31 : f32 to vector<16x128xf32>
    %103 = arith.addf %101, %102 : vector<16x128xf32>
    %104 = arith.mulf %101, %103 : vector<16x128xf32>
    %cst_32 = arith.constant 2.000000e+00 : f32
    %105 = vector.broadcast %cst_32 : f32 to vector<16x128xf32>
    %106 = arith.addf %104, %105 : vector<16x128xf32>
    %107 = tpu.reciprocal %106 {approx = true} : vector<16x128xf32> -> vector<16x128xf32>
    %108 = arith.mulf %104, %107 : vector<16x128xf32>
    %109 = arith.mulf %98, %108 : vector<16x128xf32>
    %110 = tpu.iota {dimensions = array<i32: 0>} : vector<16x128xi32>
    %111 = vector.broadcast %0 : i32 to vector<16x128xi32>
    %112 = arith.addi %110, %111 : vector<16x128xi32>
    %113 = tpu.iota {dimensions = array<i32: 1>} : vector<16x128xi32>
    %c-1640531535_i32_33 = arith.constant -1640531535 : i32
    %114 = vector.broadcast %c-1640531535_i32_33 : i32 to vector<16x128xi32>
    %115 = arith.muli %112, %114 : vector<16x128xi32>
    %c-2048144789_i32_34 = arith.constant -2048144789 : i32
    %116 = vector.broadcast %c-2048144789_i32_34 : i32 to vector<16x128xi32>
    %117 = arith.muli %113, %116 : vector<16x128xi32>
    %118 = arith.xori %115, %117 : vector<16x128xi32>
    %119 = vector.broadcast %1 : i32 to vector<16x128xi32>
    %120 = arith.xori %118, %119 : vector<16x128xi32>
    %c1209535135_i32 = arith.constant 1209535135 : i32
    %121 = vector.broadcast %c1209535135_i32 : i32 to vector<16x128xi32>
    %122 = arith.xori %120, %121 : vector<16x128xi32>
    %c16_i32_35 = arith.constant 16 : i32
    %123 = vector.broadcast %c16_i32_35 : i32 to vector<16x128xi32>
    %124 = arith.shrui %122, %123 : vector<16x128xi32>
    %125 = arith.xori %122, %124 : vector<16x128xi32>
    %c-2048144789_i32_36 = arith.constant -2048144789 : i32
    %126 = vector.broadcast %c-2048144789_i32_36 : i32 to vector<16x128xi32>
    %127 = arith.muli %125, %126 : vector<16x128xi32>
    %c13_i32_37 = arith.constant 13 : i32
    %128 = vector.broadcast %c13_i32_37 : i32 to vector<16x128xi32>
    %129 = arith.shrui %127, %128 : vector<16x128xi32>
    %130 = arith.xori %127, %129 : vector<16x128xi32>
    %c-1028477387_i32_38 = arith.constant -1028477387 : i32
    %131 = vector.broadcast %c-1028477387_i32_38 : i32 to vector<16x128xi32>
    %132 = arith.muli %130, %131 : vector<16x128xi32>
    %c16_i32_39 = arith.constant 16 : i32
    %133 = vector.broadcast %c16_i32_39 : i32 to vector<16x128xi32>
    %134 = arith.shrui %132, %133 : vector<16x128xi32>
    %135 = arith.xori %132, %134 : vector<16x128xi32>
    %c1288490188_i32_40 = arith.constant 1288490188 : i32
    %136 = vector.broadcast %c1288490188_i32_40 : i32 to vector<16x128xi32>
    %137 = arith.cmpi uge, %135, %136 : vector<16x128xi32>
    %138 = arith.extui %137 : vector<16x128xi1> to vector<16x128xi32>
    %139 = arith.sitofp %138 : vector<16x128xi32> to vector<16x128xf32>
    %cst_41 = arith.constant 1.42857146 : f32
    %140 = vector.broadcast %cst_41 : f32 to vector<16x128xf32>
    %141 = arith.mulf %139, %140 : vector<16x128xf32>
    %142 = arith.mulf %109, %141 : vector<16x128xf32>
    %c0_42 = arith.constant 0 : index
    %c0_43 = arith.constant 0 : index
    %143 = vector.load %arg6[%c0_42, %c0_43] : memref<16x128xf32, #tpu.memory_space<vmem>>, vector<16x128xf32>
    tpu.vector_store %arg6[%c0_42, %c0_43], %142 {strides = array<i32>} : memref<16x128xf32, #tpu.memory_space<vmem>>, vector<16x128xf32>,
    return
  }
  func.func @transform_0(%arg0: i32, %arg1: memref<1xi32, #tpu.memory_space<smem>>) -> (i32, i32) {
    %c0_i32 = arith.constant 0 : i32
    %c0_i32_0 = arith.constant 0 : i32
    return %arg0, %c0_i32 : i32, i32
  }
  func.func @transform_1(%arg0: i32, %arg1: memref<1xi32, #tpu.memory_space<smem>>) -> (i32, i32) {
    %c0_i32 = arith.constant 0 : i32
    %c0_i32_0 = arith.constant 0 : i32
    %c0_i32_1 = arith.constant 0 : i32
    return %c0_i32, %c0_i32_0 : i32, i32
  }
  func.func @transform_2(%arg0: i32, %arg1: memref<1xi32, #tpu.memory_space<smem>>) -> (i32, i32) {
    %c0_i32 = arith.constant 0 : i32
    %c0_i32_0 = arith.constant 0 : i32
    %c0_i32_1 = arith.constant 0 : i32
    return %c0_i32, %c0_i32_0 : i32, i32
  }
  func.func @transform_3(%arg0: i32, %arg1: memref<1xi32, #tpu.memory_space<smem>>) -> (i32, i32) {
    %c0_i32 = arith.constant 0 : i32
    %c0_i32_0 = arith.constant 0 : i32
    %c0_i32_1 = arith.constant 0 : i32
    return %c0_i32, %c0_i32_0 : i32, i32
  }
  func.func @transform_4(%arg0: i32, %arg1: memref<1xi32, #tpu.memory_space<smem>>) -> (i32, i32) {
    %c0_i32 = arith.constant 0 : i32
    %c0_i32_0 = arith.constant 0 : i32
    return %arg0, %c0_i32 : i32, i32
  }
}

</mosaic_0001>

<bundles_post_ra>
// kernel: tpu_custom_call.1
= control target key start
LH: loop header
LB: loop body
LE: loop exit
PB: predicated region body
PF: predicated region fallthrough
CT: control target
= control target key end

     0   :  { %11 = vsyncpa [#allocation5], 0  ;;  %s810_s0 = inlined_call_operand.<no memory space> [shape: s32[1], index: 0, kind: input, shape index: {}]   ;;  %s811_s1 = inlined_call_operand.hbm [shape: bf16[16,32], index: 1, kind: input, shape index: {}]   ;;  %s812_s2 = inlined_call_operand.hbm [shape: bf16[32,32], index: 2, kind: input, shape index: {}]   ;;  %s813_s3 = inlined_call_operand.hbm [shape: bf16[32,32], index: 3, kind: input, shape index: {}]   ;;  %s814_s4 = inlined_call_operand.hbm [shape: bf16[32,128], index: 4, kind: input, shape index: {}]   ;;  %s815_s5 = inlined_call_operand.hbm [shape: f32[16,128], index: 5, kind: output, shape index: {}]  }
   0x1   :  { %12 = vsyncpa [#allocation8], 0 }
   0x2   :  { %13 = vsyncpa [#allocation11], 0 }
   0x3   :  { %14 = vsyncpa [#allocation6], 0  ;;  %s652_s18 = smov [#allocation7]   ;;  %s653_s20 = smov [#allocation4]  }
   0x4   :  { %s32_s19 = sshll.u32 %s652_s18, 4  ;;  %s20_s21 = sshll.u32 %s653_s20, 4  ;;  %s33_s19 = int_to_ptr.vmem [resolvable:$true] %s32_s19  ;;  %s693_s21 = int_to_ptr.vmem [resolvable:$true] %s20_s21 }
   0x5   :  { %s534_s24 = scalar_lea.hbm %s812_s2, 256 }
   0x6   :  { %p535_p0 = scmp.ne.s32.totalorder %s812_s2, %s534_s24  ;;  %p538_p1 = scmp.lt.u32.totalorder %s534_s24, %s812_s2 }
   0x8   :  { %p540_p2 = pnand %p538_p1, %p535_p0 }
   0xa   :  { %543 = shalt.err (!%p540_p2)
}
   0xb   :  { %s544_s29 = scalar_lea.vmem %s33_s19, 256  ;;  %p549_p4 = scmp.lt.s32.totalorder %s33_s19, %s33_s19 }
   0xc   :  { %p545_p3 = scmp.ne.s32.totalorder %s33_s19, %s544_s29  ;;  %p550_p5 = scmp.lt.s32.totalorder %s544_s29, %s544_s29 }
   0xe   :  { %p551_p6 = por %p550_p5, %p549_p4 }
  0x10   :  { %p552_p7 = pnand %p551_p6, %p545_p3 }
  0x12   :  { %555 = shalt.err (!%p552_p7)
}
  0x13   :  { %s654_s30 = smov 64   ;;  %s655_s6 = smov 4  }
  0x14   :  { %38 = dma.hbm_to_vmem [thread:$0]  %s812_s2, 256, %s33_s19, [#allocation8], %s654_s30, %s654_s30, %s655_s6  }
  0x15   :  { %s556_s11 = scalar_lea.hbm %s811_s1, 128 }
  0x16   :  { %p557_p8 = scmp.ne.s32.totalorder %s811_s1, %s556_s11  ;;  %p560_p9 = scmp.lt.u32.totalorder %s556_s11, %s811_s1 }
  0x18   :  { %p562_p10 = pnand %p560_p9, %p557_p8 }
  0x1a   :  { %565 = shalt.err (!%p562_p10)
}
  0x1b   :  { %s566_s16 = scalar_lea.vmem %s693_s21, 128  ;;  %p571_p12 = scmp.lt.s32.totalorder %s693_s21, %s693_s21 }
  0x1c   :  { %p567_p11 = scmp.ne.s32.totalorder %s693_s21, %s566_s16  ;;  %p572_p13 = scmp.lt.s32.totalorder %s566_s16, %s566_s16 }
  0x1e   :  { %p573_p0 = por %p572_p13, %p571_p12 }
  0x20   :  { %p574_p1 = pnand %p573_p0, %p567_p11 }
  0x22   :  { %577 = shalt.err (!%p574_p1)
}
  0x23   :  { %26 = dma.hbm_to_vmem [thread:$0]  %s811_s1, 128, %s693_s21, [#allocation5], %s654_s30, %s654_s30, %s655_s6  }
  0x24   :  { %s656_s18 = smov [#allocation9]   ;;  %s657_s20 = smov [#allocation10]  }
  0x25   :  { %s44_s19 = sshll.u32 %s656_s18, 4  ;;  %s56_s22 = sshll.u32 %s657_s20, 4  ;;  %s45_s19 = int_to_ptr.vmem [resolvable:$true] %s44_s19  ;;  %s730_s22 = int_to_ptr.vmem [resolvable:$true] %s56_s22 }
  0x26   :  { %s578_s25 = scalar_lea.hbm %s813_s3, 256 }
  0x27   :  { %p579_p2 = scmp.ne.s32.totalorder %s813_s3, %s578_s25  ;;  %p582_p3 = scmp.lt.u32.totalorder %s578_s25, %s813_s3 }
  0x29   :  { %p584_p4 = pnand %p582_p3, %p579_p2 }
  0x2b   :  { %587 = shalt.err (!%p584_p4)
}
  0x2c   :  { %s588_s1 = scalar_lea.vmem %s45_s19, 256  ;;  %p593_p6 = scmp.lt.s32.totalorder %s45_s19, %s45_s19 }
  0x2d   :  { %p589_p5 = scmp.ne.s32.totalorder %s45_s19, %s588_s1  ;;  %p594_p7 = scmp.lt.s32.totalorder %s588_s1, %s588_s1 }
  0x2f   :  { %p595_p8 = por %p594_p7, %p593_p6 }
  0x31   :  { %p596_p9 = pnand %p595_p8, %p589_p5 }
  0x33   :  { %599 = shalt.err (!%p596_p9)
}
  0x34   :  { %50 = dma.hbm_to_vmem [thread:$0]  %s813_s3, 256, %s45_s19, [#allocation8], %s654_s30, %s654_s30, %s655_s6  }
  0x35   :  { %s600_s10 = scalar_lea.hbm %s814_s4, 256 }
  0x36   :  { %p601_p10 = scmp.ne.s32.totalorder %s814_s4, %s600_s10  ;;  %p604_p11 = scmp.lt.u32.totalorder %s600_s10, %s814_s4 }
  0x38   :  { %p606_p12 = pnand %p604_p11, %p601_p10 }
  0x3a   :  { %609 = shalt.err (!%p606_p12)
}
  0x3b   :  { %s610_s15 = scalar_lea.vmem %s730_s22, 256  ;;  %p615_p0 = scmp.lt.s32.totalorder %s730_s22, %s730_s22 }
  0x3c   :  { %p611_p13 = scmp.ne.s32.totalorder %s730_s22, %s610_s15  ;;  %p616_p1 = scmp.lt.s32.totalorder %s610_s15, %s610_s15 }
  0x3e   :  { %p617_p2 = por %p616_p1, %p615_p0 }
  0x40   :  { %p618_p3 = pnand %p617_p2, %p611_p13 }
  0x42   :  { %621 = shalt.err (!%p618_p3)
}
  0x43   :  { %62 = dma.hbm_to_vmem [thread:$0]  %s814_s4, 256, %s730_s22, [#allocation11], %s654_s30, %s654_s30, %s655_s6  }
  0x44   :  { %644 = dma.done.wait [#allocation5], 128  }
  0x45   :  { %645 = vsyncadd [#allocation5], 4294967168 }
  0x46   :  { %646 = dma.done.wait [#allocation8], 512  }
  0x47   :  { %647 = vsyncadd [#allocation8], 4294966784 }
  0x48   :  { %648 = dma.done.wait [#allocation11], 256  }
  0x49   :  { %649 = vsyncadd [#allocation11], 4294967040  ;;  %v658_v0 = vmov 0.0   ;;  %vm659_vm0 = vmmov 0   ;;  %v503_v1 = vld [vmem:[#allocation7] sm:$0xff]   ;;  %v504_v2 = vld [vmem:[#allocation7 + $0x8] sm:$0xff]   ;;  %v164_v6 = vlaneseq  ;;  %v177_v15 = vstv %s810_s0 }
  0x4a   :  { %468 = vmatprep.subr.bf16.mxu0 %v658_v0  ;;  %472 = vmatprep.mubr.msk.bf16.mxu0 %vm659_vm0, %v658_v0  ;;  %v505_v3 = vld [vmem:[#allocation4] sm:$0xff]   ;;  %vm101_vm1 = vcmask 261120   ;;  %v506_v4 = vld [vmem:[#allocation9] sm:$0xff]   ;;  %s660_s0 = smov [#allocation12]  }
  0x4b   :  { %476 = vmatprep.subr.bf16.mxu1 %v658_v0  ;;  %480 = vmatprep.mubr.msk.bf16.mxu1 %vm659_vm0, %v658_v0  ;;  %v507_v5 = vld [vmem:[#allocation9 + $0x8] sm:$0xff]   ;;  %v165_v7 = vshrl.u32 %v164_v6, 7  ;;  %v171_v8 = vand.u32 127, %v164_v6  ;;  %s429_s6 = sshll.u32 %s660_s0, 4  ;;  %s430_s6 = int_to_ptr.vmem [resolvable:$true] %s429_s6 }
  0x4c   :  { %469 = vmatpush3.bf16.msra.mxu0 %v503_v1  ;;  %477 = vmatpush3.bf16.msra.mxu1 %v506_v4  ;;  %s622_s2 = scalar_lea.vmem %s430_s6, 256  ;;  %p627_p5 = scmp.lt.s32.totalorder %s430_s6, %s430_s6 }
  0x4d   :  { %470 = vmatprep.subr.bf16.mxu0 %v658_v0  ;;  %478 = vmatprep.subr.bf16.mxu1 %v658_v0  ;;  %v166_v9 = vadd.s32 8, %v165_v7  ;;  %v172_v10 = vmul.u32 2654435761, %v165_v7  ;;  %v174_v11 = vmul.u32 2246822507, %v171_v8  ;;  %p623_p4 = scmp.ne.s32.totalorder %s430_s6, %s622_s2  ;;  %p628_p6 = scmp.lt.s32.totalorder %s622_s2, %s622_s2 }
  0x4f   :  { %v173_v12 = vmul.u32 2654435761, %v166_v9  ;;  %v175_v13 = vxor.u32 %v174_v11, %v172_v10  ;;  %p629_p7 = por %p628_p6, %p627_p5 }
  0x50   :  { %471 = vmatpush3.bf16.msra.mxu0 %v504_v2  ;;  %479 = vmatpush3.bf16.msra.mxu1 %v507_v5  ;;  %v508_v2 = vld [vmem:[#allocation10] sm:$0xff]  }
  0x51   :  { %484 = vmatprep.subr.bf16.mxu0 %v658_v0  ;;  %v176_v14 = vxor.u32 %v174_v11, %v173_v12  ;;  %v779_v16 = vxor.u32 %v177_v15, %v175_v13  ;;  %p630_p8 = pnand %p629_p7, %p623_p4 }
  0x53   :  { %473 = vmatmul.mubr.msk.bf16.vlgmr.msra.gmra.mrb[0].mxu0 %vm101_vm1, %v505_v3  ;;  %v781_v17 = vxor.u32 %v177_v15, %v176_v14  ;;  %v180_v18 = vxor.u32 3266489909, %v779_v16  ;;  %v509_v3 = vld [vmem:[#allocation10 + $0x8] sm:$0xff]   ;;  %v287_v4 = vxor.u32 2238012522, %v779_v16 }
  0x54   :  { %488 = vmatprep.mubr.msk.bf16.mxu0 %vm659_vm0, %v658_v0  ;;  %485 = vmatpush3.bf16.msra.mxu0 %v508_v2 }
  0x55   :  { %v181_v19 = vxor.u32 3266489909, %v781_v17  ;;  %v182_v20 = vshrl.u32 %v180_v18, 16  ;;  %486 = vmatprep.subr.bf16.mxu0 %v658_v0  ;;  %v288_v5 = vxor.u32 2238012522, %v781_v17  ;;  %v289_v6 = vshrl.u32 %v287_v4, 16 }
  0x57   :  { %v183_v21 = vshrl.u32 %v181_v19, 16  ;;  %v184_v24 = vxor.u32 %v182_v20, %v180_v18  ;;  %v290_v7 = vshrl.u32 %v288_v5, 16  ;;  %v291_v10 = vxor.u32 %v289_v6, %v287_v4 }
  0x58   :  { %487 = vmatpush3.bf16.msra.mxu0 %v509_v3 }
  0x59   :  { %v185_v26 = vxor.u32 %v183_v21, %v181_v19  ;;  %v186_v31 = vmul.u32 2246822507, %v184_v24  ;;  %v292_v12 = vxor.u32 %v290_v7, %v288_v5  ;;  %v293_v19 = vmul.u32 2246822507, %v291_v10 }
  0x5b   :  { %v187_v33 = vmul.u32 2246822507, %v185_v26  ;;  %v188_v34 = vshrl.u32 %v186_v31, 13  ;;  %v294_v21 = vmul.u32 2246822507, %v292_v12 }
  0x5d   :  { %v189_v35 = vshrl.u32 %v187_v33, 13  ;;  %v190_v36 = vxor.u32 %v188_v34, %v186_v31 }
  0x5f   :  { %v191_v37 = vxor.u32 %v189_v35, %v187_v33  ;;  %v192_v41 = vmul.u32 3266489909, %v190_v36 }
  0x61   :  { %v193_v42 = vmul.u32 3266489909, %v191_v37  ;;  %v194_v47 = vshrl.u32 %v192_v41, 16 }
  0x63   :  { %v195_v48 = vshrl.u32 %v193_v42, 16  ;;  %v196_v50 = vxor.u32 %v194_v47, %v192_v41 }
  0x65   :  { %v197_v51 = vxor.u32 %v195_v48, %v193_v42  ;;  %vm198_vm2 = vcmp.ge.u32.totalorder %v196_v50, 1288490188 }
  0x66   :  { %v447_v53 = vsel %vm198_vm2, 1.0, %v658_v0 }
  0x67   :  { %vm199_vm3 = vcmp.ge.u32.totalorder %v197_v51, 1288490188  ;;  %v204_v58 = vmul.f32 1.4285715, %v447_v53  ;;  %v394_v53 = vxor.u32 1209535135, %v779_v16 }
  0x68   :  { %v448_v54 = vsel %vm199_vm3, 1.0, %v658_v0 }
  0x69   :  { %v205_v60 = vmul.f32 1.4285715, %v448_v54  ;;  %v395_v54 = vxor.u32 1209535135, %v781_v17 }
 0x126   :  { %v139_v22 = vpop.f32.mrb[0].mxu0 }
 0x127   :  { %v146_v23 = vmin.f32 %v139_v22, 20.0  ;;  %v474_v25 = vpop.f32.mrb[1].mxu0 }
 0x128   :  { %v142_v27 = vpop.f32.mrb[2].mxu0 }
 0x129   :  { %v148_v28 = vmul.f32 1.442695, %v146_v23  ;;  %v147_v29 = vmin.f32 %v142_v27, 20.0  ;;  %v475_v30 = vpop.f32.mrb[3].mxu0  ;;  %v296_v23 = vshrl.u32 %v294_v21, 13 }
 0x12b   :  { %510 = vpow2.f32 %v148_v28  ;;  %v150_v32 = vmul.f32 1.442695, %v147_v29  ;;  %v298_v25 = vxor.u32 %v296_v23, %v294_v21 }
 0x12d   :  { %512 = vpow2.f32 %v150_v32  ;;  %v300_v30 = vmul.u32 3266489909, %v298_v25 }
 0x12f   :  { %v302_v36 = vshrl.u32 %v300_v30, 16 }
 0x135   :  { %v511_v38 = vpop.eup %510 }
 0x136   :  { %v152_v39 = vadd.f32 2.0, %v511_v38 }
 0x137   :  { %v513_v40 = vpop.eup %512 }
 0x138   :  { %v154_v43 = vmul.f32 %v511_v38, %v152_v39  ;;  %v153_v44 = vadd.f32 2.0, %v513_v40  ;;  %v304_v39 = vxor.u32 %v302_v36, %v300_v30 }
 0x13a   :  { %v156_v45 = vadd.f32 2.0, %v154_v43  ;;  %v155_v46 = vmul.f32 %v513_v40, %v153_v44  ;;  %vm306_vm5 = vcmp.ge.u32.totalorder %v304_v39, 1288490188 }
 0x13b   :  { %v453_v42 = vsel %vm306_vm5, 1.0, %v658_v0 }
 0x13c   :  { %514 = vrcp.f32 %v156_v45  ;;  %v157_v49 = vadd.f32 2.0, %v155_v46  ;;  %v312_v48 = vmul.f32 1.4285715, %v453_v42 }
 0x13e   :  { %516 = vrcp.f32 %v157_v49 }
 0x146   :  { %v515_v52 = vpop.eup %514 }
 0x147   :  { %v160_v55 = vmul.f32 %v515_v52, %v154_v43 }
 0x148   :  { %v517_v56 = vpop.eup %516 }
 0x149   :  { %v162_v57 = vmul.f32 %v160_v55, %v139_v22  ;;  %v161_v59 = vmul.f32 %v517_v56, %v155_v46  ;;  %v295_v22 = vshrl.u32 %v293_v19, 13  ;;  %v396_v55 = vshrl.u32 %v394_v53, 16 }
 0x14a   :  { %v397_v56 = vshrl.u32 %v395_v54, 16 }
 0x14b   :  { %v163_v61 = vmul.f32 %v161_v59, %v142_v27  ;;  %v206_v62 = vmul.f32 %v204_v58, %v162_v57  ;;  %v297_v24 = vxor.u32 %v295_v22, %v293_v19  ;;  %v398_v57 = vxor.u32 %v396_v55, %v394_v53 }
 0x14d   :  { %v207_v63 = vmul.f32 %v205_v60, %v163_v61  ;;  %v299_v29 = vmul.u32 3266489909, %v297_v24  ;;  %v399_v61 = vxor.u32 %v397_v56, %v395_v54 }
 0x14f   :  { %v212_v1 = vpack.c.bf16 %v207_v63, %v206_v62  ;;  %v301_v35 = vshrl.u32 %v299_v29, 16  ;;  %v401_v5 = vmul.u32 2246822507, %v399_v61 }
 0x151   :  { %481 = vmatmul.mubr.msk.bf16.vlgmr.msra.gmra.mrb[0].mxu1 %vm101_vm1, %v212_v1  ;;  %v303_v38 = vxor.u32 %v301_v35, %v299_v29  ;;  %v400_v1 = vmul.u32 2246822507, %v398_v57  ;;  %v403_v16 = vshrl.u32 %v401_v5, 13 }
 0x153   :  { %vm305_vm4 = vcmp.ge.u32.totalorder %v303_v38, 1288490188  ;;  %v402_v6 = vshrl.u32 %v400_v1, 13  ;;  %v405_v17 = vxor.u32 %v403_v16, %v401_v5 }
 0x154   :  { %v452_v41 = vsel %vm305_vm4, 1.0, %v658_v0 }
 0x155   :  { %v311_v46 = vmul.f32 1.4285715, %v452_v41  ;;  %v404_v7 = vxor.u32 %v402_v6, %v400_v1  ;;  %v407_v12 = vmul.u32 3266489909, %v405_v17 }
 0x224   :  { %v262_v8 = vpop.f32.mrb[0].mxu1 }
 0x225   :  { %v269_v9 = vmin.f32 %v262_v8, 20.0  ;;  %v482_v11 = vpop.f32.mrb[1].mxu1 }
 0x226   :  { %v265_v13 = vpop.f32.mrb[2].mxu1 }
 0x227   :  { %v271_v14 = vmul.f32 1.442695, %v269_v9  ;;  %v270_v15 = vmin.f32 %v265_v13, 20.0  ;;  %v483_v18 = vpop.f32.mrb[3].mxu1  ;;  %v406_v9 = vmul.u32 3266489909, %v404_v7 }
 0x229   :  { %518 = vpow2.f32 %v271_v14  ;;  %v273_v20 = vmul.f32 1.442695, %v270_v15  ;;  %v408_v15 = vshrl.u32 %v406_v9, 16 }
 0x22b   :  { %520 = vpow2.f32 %v273_v20  ;;  %v409_v20 = vshrl.u32 %v407_v12, 16  ;;  %v410_v22 = vxor.u32 %v408_v15, %v406_v9 }
 0x22d   :  { %v411_v23 = vxor.u32 %v409_v20, %v407_v12  ;;  %vm412_vm6 = vcmp.ge.u32.totalorder %v410_v22, 1288490188 }
 0x22e   :  { %v457_v24 = vsel %vm412_vm6, 1.0, %v658_v0 }
 0x22f   :  { %vm413_vm7 = vcmp.ge.u32.totalorder %v411_v23, 1288490188 }
 0x233   :  { %v519_v26 = vpop.eup %518 }
 0x234   :  { %v275_v27 = vadd.f32 2.0, %v519_v26 }
 0x235   :  { %v521_v28 = vpop.eup %520 }
 0x236   :  { %v277_v31 = vmul.f32 %v519_v26, %v275_v27  ;;  %v276_v32 = vadd.f32 2.0, %v521_v28  ;;  %v458_v26 = vsel %vm413_vm7, 1.0, %v658_v0 }
 0x238   :  { %v279_v33 = vadd.f32 2.0, %v277_v31  ;;  %v278_v34 = vmul.f32 %v521_v28, %v276_v32  ;;  %v418_v28 = vmul.f32 1.4285715, %v457_v24  ;;  %v419_v32 = vmul.f32 1.4285715, %v458_v26 }
 0x23a   :  { %522 = vrcp.f32 %v279_v33  ;;  %v280_v37 = vadd.f32 2.0, %v278_v34 }
 0x23c   :  { %524 = vrcp.f32 %v280_v37 }
 0x244   :  { %v523_v40 = vpop.eup %522 }
 0x245   :  { %v283_v43 = vmul.f32 %v523_v40, %v277_v31 }
 0x246   :  { %v525_v44 = vpop.eup %524 }
 0x247   :  { %v285_v45 = vmul.f32 %v283_v43, %v262_v8  ;;  %v284_v47 = vmul.f32 %v525_v44, %v278_v34 }
 0x249   :  { %v286_v49 = vmul.f32 %v284_v47, %v265_v13  ;;  %v313_v50 = vmul.f32 %v311_v46, %v285_v45 }
 0x24b   :  { %v314_v51 = vmul.f32 %v312_v48, %v286_v49 }
 0x24d   :  { %v319_v52 = vpack.c.bf16 %v314_v51, %v313_v50 }
 0x24f   :  { %489 = vmatmul.mubr.msk.bf16.vlgmr.msra.gmra.mrb[4].mxu0 %vm101_vm1, %v319_v52 }
 0x322   :  { %v369_v58 = vpop.f32.mrb[4].mxu0 }
 0x323   :  { %v376_v59 = vmin.f32 %v369_v58, 20.0  ;;  %v490_v60 = vpop.f32.mrb[5].mxu0 }
 0x324   :  { %v372_v62 = vpop.f32.mrb[6].mxu0 }
 0x325   :  { %v378_v63 = vmul.f32 1.442695, %v376_v59  ;;  %v377_v2 = vmin.f32 %v372_v62, 20.0  ;;  %v491_v3 = vpop.f32.mrb[7].mxu0 }
 0x327   :  { %526 = vpow2.f32 %v378_v63  ;;  %v380_v4 = vmul.f32 1.442695, %v377_v2 }
 0x329   :  { %528 = vpow2.f32 %v380_v4 }
 0x331   :  { %v527_v8 = vpop.eup %526 }
 0x332   :  { %v382_v10 = vadd.f32 2.0, %v527_v8 }
 0x333   :  { %v529_v11 = vpop.eup %528 }
 0x334   :  { %v384_v13 = vmul.f32 %v527_v8, %v382_v10  ;;  %v383_v14 = vadd.f32 2.0, %v529_v11 }
 0x336   :  { %v386_v18 = vadd.f32 2.0, %v384_v13  ;;  %v385_v19 = vmul.f32 %v529_v11, %v383_v14 }
 0x338   :  { %530 = vrcp.f32 %v386_v18  ;;  %v387_v21 = vadd.f32 2.0, %v385_v19 }
 0x33a   :  { %532 = vrcp.f32 %v387_v21 }
 0x342   :  { %v531_v25 = vpop.eup %530 }
 0x343   :  { %v390_v27 = vmul.f32 %v531_v25, %v384_v13 }
 0x344   :  { %v533_v29 = vpop.eup %532 }
 0x345   :  { %v392_v30 = vmul.f32 %v390_v27, %v369_v58  ;;  %v391_v31 = vmul.f32 %v533_v29, %v385_v19 }
 0x347   :  { %v420_v33 = vmul.f32 %v418_v28, %v392_v30  ;;  %v393_v34 = vmul.f32 %v391_v31, %v372_v62 }
 0x349   :  { %422 = vst [vmem:[#allocation12] sm:$0xff] %v420_v33  ;;  %v421_v35 = vmul.f32 %v419_v32, %v393_v34 }
 0x34b   :  { %423 = vst [vmem:[#allocation12 + $0x8] sm:$0xff] %v421_v35 }
 0x34c   :  { %633 = shalt.err (!%p630_p8)
}
 0x34d   :  { %s634_s19 = scalar_lea.hbm %s815_s5, 256 }
 0x34e   :  { %p635_p9 = scmp.ne.s32.totalorder %s815_s5, %s634_s19  ;;  %p638_p10 = scmp.lt.u32.totalorder %s634_s19, %s815_s5 }
 0x350   :  { %p640_p11 = pnand %p638_p10, %p635_p9 }
 0x352   :  { %643 = shalt.err (!%p640_p11)
}
 0x353   :  { %s661_s25 = smov 128   ;;  %s662_s26 = smov 8  }
 0x354   :  { %435 = dma.vmem_to_hbm [thread:$0]  %s430_s6, 256, %s815_s5, [#allocation6], %s661_s25, %s661_s25, %s662_s26  }
 0x355   :  { %650 = dma.done.wait [#allocation6], 256  }
 0x356   :  { %651 = vsyncadd [#allocation6], 4294967040 }
 0x357   :  { %439 = vsyncpa [#allocation5], 1 }
 0x358   :  { %440 = vsyncpa [#allocation8], 1 }
 0x359   :  { %441 = vsyncpa [#allocation11], 1 }
 0x35a   :  { %442 = vsyncpa [#allocation6], 1 }

</bundles_post_ra>
